<compile_context>
chip_gen: v5e
topology: v5e:2x2
jax: 0.10.0
libtpu: 0.0.40
codegen_flags: <defaults>
</compile_context>

<pallas_src>
import functools

import jax
import jax.numpy as jnp
from jax.experimental import pallas as pl
from jax.experimental.pallas import tpu as pltpu


def _cdiv(a, b):
    return -(-a // b)


def _round_down(x, m):
    return (x // m) * m


def _make_l2norm_kernel(scale):
    scale = float(scale)  # compile-time constant, folded into coef below

    def kernel(x_ref, o_ref):
        # x_ref: (b_tile, C, hw_tile) block in VMEM; reduction is over axis=1 (C),
        # which is always the full channel extent, so partial batch / lane blocks
        # (masked on store) can never contaminate valid outputs.
        x = x_ref[...].astype(jnp.float32)
        sumsq = jnp.sum(x * x, axis=1, keepdims=True)          # (b_tile, 1, hw_tile)
        coef = scale * jax.lax.rsqrt(jnp.maximum(sumsq, 1e-12))  # clamp then EUP rsqrt
        o_ref[...] = (x * coef).astype(o_ref.dtype)

    return kernel


@functools.partial(jax.jit, static_argnames=("scale",))
def l2normalization(x_nchw, scale):
    """x_nchw: (N, C, H, W). Returns scale * x / sqrt(clamp(sum_c x^2, 1e-12))."""
    N, C, H, W = x_nchw.shape
    HW = H * W
    itemsize = jnp.dtype(x_nchw.dtype).itemsize

    LANE = 128
    # Per-grid-step VMEM working set budget: double-buffered in + out blocks in the
    # HBM dtype, plus ~2 full-size f32 temporaries (upcast x, product) inside the body.
    VMEM_BUDGET = 24 << 20
    per_elem_bytes = 4 * itemsize + 8
    max_block_elems = max(LANE, VMEM_BUDGET // per_elem_bytes)

    x3 = x_nchw.reshape(N, C, HW)  # contiguous reshape, no data movement

    if C * HW <= max_block_elems:
        # ---- Case A: full-HW blocks, contiguous DMA, grid over batch only ----
        b_cap = max(1, max_block_elems // (C * HW))
        # Keep at least ~8 grid steps when N allows it (megacore / pipeline depth),
        # otherwise take the biggest block that fits the budget.
        b_tile = max(1, min(N, b_cap, _cdiv(N, 8)))
        grid = (_cdiv(N, b_tile),)
        blk = (b_tile, C, HW)
        in_specs = [pl.BlockSpec(blk, lambda i: (i, 0, 0))]
        out_specs = pl.BlockSpec(blk, lambda i: (i, 0, 0))
        dim_sem = ("parallel",)
    else:
        # ---- Case B: very large C*HW -> lane tiling, one batch element per block --
        hw_full = _cdiv(HW, LANE) * LANE
        hw_cap = max(LANE, _round_down(max_block_elems // C, LANE))
        hw_tile = min(hw_full, max(4 * LANE, hw_cap))   # prefer >= 512-lane DMA runs
        grid = (N, _cdiv(HW, hw_tile))
        blk = (1, C, hw_tile)
        in_specs = [pl.BlockSpec(blk, lambda i, j: (i, 0, j))]
        out_specs = pl.BlockSpec(blk, lambda i, j: (i, 0, j))
        dim_sem = ("parallel", "parallel")

    out3 = pl.pallas_call(
        _make_l2norm_kernel(scale),
        out_shape=jax.ShapeDtypeStruct((N, C, HW), x_nchw.dtype),
        grid_spec=pltpu.PrefetchScalarGridSpec(
            num_scalar_prefetch=0,
            grid=grid,
            in_specs=in_specs,
            out_specs=out_specs,
        ),
        compiler_params=pltpu.CompilerParams(
            dimension_semantics=dim_sem,
            vmem_limit_bytes=48 << 20,   # > v5e's 16 MiB default, < v7x's 64 MiB phys
        ),
    )(x3)

    return out3.reshape(N, C, H, W)


def _reference(x, scale):
    sumsq = jnp.sum(x.astype(jnp.float32) ** 2, axis=1, keepdims=True)
    return (scale * x.astype(jnp.float32)
            * jax.lax.rsqrt(jnp.maximum(sumsq, 1e-12))).astype(x.dtype)


if __name__ == "__main__":
    key = jax.random.PRNGKey(0)
    N, C, H, W = 2, 4, 16, 16
    x = jax.random.normal(key, (N, C, H, W), dtype=jnp.float32)
    scale = 20.0  # deterministic scale parameter (as in SSD L2Norm init)

    out = l2normalization(x, scale)
    out = jax.block_until_ready(out)

    ref = _reference(x, scale)
    assert out.shape == (N, C, H, W)
    assert jnp.allclose(out, ref, atol=1e-5, rtol=1e-5), "mismatch vs reference"
    print("KERNEL_OK")
</pallas_src>

<mosaic_0001>
module attributes {stable_mosaic.version = 11 : i64} {
  func.func @kernel(%arg0: i32, %arg1: memref<1x4x256xf32, #tpu.memory_space<vmem>>, %arg2: memref<1x4x256xf32, #tpu.memory_space<vmem>>) attributes {dimension_semantics = [#tpu.dimension_semantics<parallel>], iteration_bounds = array<i64: 2>, scalar_prefetch = 0 : i64, scratch_operands = 0 : i64, tpu.core_type = #tpu.core_type<tc>, window_params = [{transform_indices = @transform_0, window_bounds = array<i64: 1, 4, 256>}, {transform_indices = @transform_1, window_bounds = array<i64: 1, 4, 256>}]} {
    %c0 = arith.constant 0 : index
    %c0_0 = arith.constant 0 : index
    %c0_1 = arith.constant 0 : index
    %0 = vector.load %arg1[%c0, %c0_0, %c0_1] : memref<1x4x256xf32, #tpu.memory_space<vmem>>, vector<1x4x256xf32>
    %1 = arith.mulf %0, %0 : vector<1x4x256xf32>
    %cst = arith.constant dense<0.000000e+00> : vector<1x256xf32>
    %2 = vector.multi_reduction <add>, %1, %cst [1] : vector<1x4x256xf32> to vector<1x256xf32>
    %3 = vector.shape_cast %2 : vector<1x256xf32> to vector<1x1x256xf32>
    %cst_2 = arith.constant 9.99999996E-13 : f32
    %4 = vector.broadcast %cst_2 : f32 to vector<1x1x256xf32>
    %5 = arith.maximumf %3, %4 : vector<1x1x256xf32>
    %6 = math.rsqrt %5 : vector<1x1x256xf32>
    %cst_3 = arith.constant 2.000000e+01 : f32
    %7 = vector.broadcast %cst_3 : f32 to vector<1x1x256xf32>
    %8 = arith.mulf %7, %6 : vector<1x1x256xf32>
    %9 = vector.broadcast %8 : vector<1x1x256xf32> to vector<1x4x256xf32>
    %10 = arith.mulf %0, %9 : vector<1x4x256xf32>
    %c0_4 = arith.constant 0 : index
    %c0_5 = arith.constant 0 : index
    %c0_6 = arith.constant 0 : index
    %11 = vector.load %arg2[%c0_4, %c0_5, %c0_6] : memref<1x4x256xf32, #tpu.memory_space<vmem>>, vector<1x4x256xf32>
    tpu.vector_store %arg2[%c0_4, %c0_5, %c0_6], %10 {strides = array<i32>} : memref<1x4x256xf32, #tpu.memory_space<vmem>>, vector<1x4x256xf32>,
    return
  }
  func.func @transform_0(%arg0: i32) -> (i32, i32, i32) {
    %c0_i32 = arith.constant 0 : i32
    %c0_i32_0 = arith.constant 0 : i32
    %c0_i32_1 = arith.constant 0 : i32
    return %arg0, %c0_i32, %c0_i32_0 : i32, i32, i32
  }
  func.func @transform_1(%arg0: i32) -> (i32, i32, i32) {
    %c0_i32 = arith.constant 0 : i32
    %c0_i32_0 = arith.constant 0 : i32
    %c0_i32_1 = arith.constant 0 : i32
    return %arg0, %c0_i32, %c0_i32_0 : i32, i32, i32
  }
}

</mosaic_0001>

<bundles_post_ra>
// kernel: l2normalization.1
= control target key start
LH: loop header
LB: loop body
LE: loop exit
PB: predicated region body
PF: predicated region fallthrough
CT: control target
= control target key end

     0   :  { %s269_s6 = smov 0   ;;  %s296_s0 = inlined_call_operand.vmem [shape: f32[2,4,256], index: 0, kind: input, shape index: {}]   ;;  %s297_s1 = inlined_call_operand.vmem [shape: f32[2,4,256], index: 1, kind: output, shape index: {}]  }
   0x1 LB: > { %s226_s7 = sadd.s32 4294967295, %s257_s6   ;;  %p230_p0 = scmp.ge.s32.totalorder %s257_s6, 1  ;;  %s257_s6 = sphi %s269_s6, %s11_s6  }
   0x2   : > { %p87_p1 = scmp.lt.s32.totalorder %s257_s6, 3 }
   0x4   : > { %p88_p2 = pnand %p230_p0, %p87_p1 }
   0x5   : > { %p107_p3 = scmp.lt.s32.totalorder (!%p88_p2), %s226_s7, 1 }
   0x6   : > { %91 = sbr.rel (%p88_p2) target bundleno = 67 (0x43), region = 24 }
   0xb   : > { %s299_s7 = smov (!%p107_p3, %s226_s7), 1  ;;  %vm125_vm0 = vcmask 1043456  }
   0xc   : > { %s237_s8 = sshll.u32 %s299_s7, 3 }
   0xd   : > { %s111_s11 = scalar_lea.vmem %s296_s0, %s237_s8  ;;  %s116_s14 = scalar_lea.vmem %s297_s1, %s237_s8 }
   0xe   : > { %v117_v0 = vld [vmem:[%s111_s11] sm:$0xff] }
   0xf   : > { %v118_v1 = vmul.f32 %v117_v0, %v117_v0 }
  0x11   : > { %120 = vst [vmem:[#allocation1] ss:$2 sm:$0xff] %v118_v1 }
  0x18   : > { %v121_v2 = vld.sshfl [vmem:[#allocation1] sm:$0xff pattern:$0x75316420]  ;;  %v122_v3 = vld.sshfl [vmem:[#allocation1 + $0x8] sm:$0xff pattern:$0x75316420] }
  0x19   : > { %v126_v4 = vsel %vm125_vm0, %v121_v2, 0.0  ;;  %v133_v5 = vsel %vm125_vm0, %v122_v3, 0.0 }
  0x1a   : > { %v127_v6 = vrot.slane %v126_v4, 4  ;;  %v134_v7 = vrot.slane %v133_v5, 4 }
  0x1c   : > { %v128_v8 = vadd.f32 %v127_v6, %v126_v4  ;;  %v135_v9 = vadd.f32 %v134_v7, %v133_v5 }
  0x1e   : > { %v129_v10 = vrot.slane %v128_v8, 2  ;;  %v136_v11 = vrot.slane %v135_v9, 2 }
  0x20   : > { %v130_v12 = vadd.f32 %v129_v10, %v128_v8  ;;  %v137_v13 = vadd.f32 %v136_v11, %v135_v9 }
  0x22   : > { %v131_v14 = vrot.slane %v130_v12, 1  ;;  %v138_v15 = vrot.slane %v137_v13, 1 }
  0x24   : > { %v132_v16 = vadd.f32 %v131_v14, %v130_v12  ;;  %v139_v17 = vadd.f32 %v138_v15, %v137_v13 }
  0x26   : > { %v140_v18 = vmax.f32 %v132_v16, 1e-12  ;;  %v141_v19 = vmax.f32 %v139_v17, 1e-12 }
  0x28   : > { %247 = vrsqrt.f32 %v140_v18  ;;  %vm148_vm3 = vweird.f32 %v140_v18  ;;  %vm158_vm5 = vweird.f32 %v141_v19 }
  0x29   : > { %249 = vrsqrt.f32 %v141_v19 }
  0x2e   : > { %v248_v20 = vpop.eup %247 }
  0x2f   : > { %v250_v21 = vpop.eup %249  ;;  %v143_v22 = vmul.f32 %v248_v20, %v140_v18  ;;  %vm149_vm1 = vweird.f32 %v248_v20 }
  0x30   : > { %v153_v23 = vmul.f32 %v250_v21, %v141_v19  ;;  %vm159_vm2 = vweird.f32 %v250_v21  ;;  %vm150_vm4 = vmor %vm148_vm3, %vm149_vm1 }
  0x31   : > { %v144_v24 = vmul.f32 %v248_v20, %v143_v22  ;;  %vm160_vm6 = vmor %vm158_vm5, %vm159_vm2 }
  0x32   : > { %v154_v25 = vmul.f32 %v250_v21, %v153_v23 }
  0x33   : > { %v145_v26 = vmul.f32 0.5, %v144_v24 }
  0x34   : > { %v155_v27 = vmul.f32 0.5, %v154_v25 }
  0x35   : > { %v146_v28 = vsub.f32 1.5, %v145_v26 }
  0x36   : > { %v156_v29 = vsub.f32 1.5, %v155_v27 }
  0x37   : > { %v147_v30 = vmul.f32 %v248_v20, %v146_v28 }
  0x38   : > { %v157_v31 = vmul.f32 %v250_v21, %v156_v29 }
  0x39   : > { %v151_v32 = vsel %vm150_vm4, %v248_v20, %v147_v30 }
  0x3a   : > { %v161_v33 = vsel %vm160_vm6, %v250_v21, %v157_v31  ;;  %v162_v35 = vmul.f32 20.0, %v151_v32 }
  0x3b   : > { %v163_v34 = vmul.f32 20.0, %v161_v33 }
  0x3d   : > { %v166_v36 = vrot.slane %v163_v34, 4 }
  0x3f   : > { %v167_v37 = vsel %vm125_vm0, %v162_v35, %v166_v36 }
  0x40   : > { %v169_v38 = vmul.f32 %v167_v37, %v117_v0 }
  0x42   : > { %170 = vst [vmem:[%s116_s14] sm:$0xff] %v169_v38 }
  0x43 PF: > { %s11_s6 = sadd.s32 1, %s257_s6  }
  0x44   : > { %p8_p4 = scmp.ge.s32.totalorder %s11_s6, 4  }
  0x46   :  { %10 = sbr.rel (!%p8_p4) target bundleno = 1 (0x1), region = 54 }

</bundles_post_ra>
